<compile_context>
chip_gen: v6e
topology: v6e:2x2x1
jax: 0.10.0
libtpu: 0.0.40
codegen_flags: <defaults>
</compile_context>

<pallas_src>
import math

import numpy as np

import jax
import jax.numpy as jnp
from jax.experimental import pallas as pl
from jax.experimental.pallas import tpu as pltpu

WINDOW_SIZE = 11
PAD = WINDOW_SIZE // 2
SIGMA = 1.5
C1 = 0.01 ** 2
C2 = 0.03 ** 2


def _gaussian_1d(window_size=WINDOW_SIZE, sigma=SIGMA):
    g = [math.exp(-((x - window_size // 2) ** 2) / (2.0 * sigma ** 2))
         for x in range(window_size)]
    s = sum(g)
    return np.asarray([v / s for v in g], dtype=np.float32)


# Deterministic "parameters" of the module: the normalized 1D Gaussian window.
_G1D = _gaussian_1d()


def _band_toeplitz(n):
    """(n, n) banded Toeplitz M with M[a, b] = g[a - b + PAD] (symmetric).

    x @ M == 'same' (zero-padded) 1-D Gaussian blur along the last axis.
    M @ x == same blur along the first axis.
    """
    m = np.zeros((n, n), np.float32)
    for a in range(n):
        for b in range(max(0, a - PAD), min(n, a + PAD + 1)):
            m[a, b] = _G1D[a - b + PAD]
    return m


def _block_diag_toeplitz(n, reps):
    """Block-diagonal Toeplitz: `reps` independent planes packed along one axis."""
    t = _band_toeplitz(n)
    if reps == 1:
        return t
    return np.kron(np.eye(reps, dtype=np.float32), t)


def _ssim_block_kernel(gw_ref, ghb_ref, x1_ref, x2_ref, out_ref):
    """SSIM partial sum for one packed slab of image planes (MXU blur + VPU tail)."""
    R, L = x1_ref.shape          # R = BH*h packed rows, L = BW*w packed lanes
    x1 = x1_ref[...].astype(jnp.float32)
    x2 = x2_ref[...].astype(jnp.float32)
    gw = gw_ref[...]             # (L, L) block-diag width-axis blur matrix
    ghb = ghb_ref[...]           # (R, R) block-diag height-axis blur matrix

    # Five quantities to blur, stacked along (8-aligned) rows -> one wide MXU
    # matmul for the width pass.
    s = jnp.concatenate([x1, x2, x1 * x1, x2 * x2, x1 * x2], axis=0)  # (5R, L)
    t = jnp.dot(s, gw, preferred_element_type=jnp.float32)            # width blur

    # Height pass: one MXU matmul per blurred quantity (static row slices are
    # aligned to multiples of R, which is a multiple of 8 when h % 8 == 0).
    mu1, mu2, e11, e22, e12 = [
        jnp.dot(ghb, t[q * R:(q + 1) * R, :], preferred_element_type=jnp.float32)
        for q in range(5)
    ]

    mu1_sq = mu1 * mu1
    mu2_sq = mu2 * mu2
    mu1_mu2 = mu1 * mu2
    sigma1_sq = e11 - mu1_sq
    sigma2_sq = e22 - mu2_sq
    sigma12 = e12 - mu1_mu2

    num = (2.0 * mu1_mu2 + C1) * (2.0 * sigma12 + C2)
    den = (mu1_sq + mu2_sq + C1) * (sigma1_sq + sigma2_sq + C2)
    # Push the divide to the EUP slot (exact reciprocal, keeps 1e-5 tolerance).
    ssim_map = num * pl.reciprocal(den, approx=False)

    if out_ref.shape[0] == 8:
        # Lane-preserving partial reduction: fold sublane groups with plain VPU
        # adds (no cross-lane XLU reduce, no scalar broadcast, unmasked store).
        acc = ssim_map[0:8, :]
        for r in range(8, R, 8):
            acc = acc + ssim_map[r:r + 8, :]
        out_ref[...] = acc
    else:
        # Fallback when R is not sublane-aligned: cross-sublane sum to one row.
        out_ref[...] = jnp.sum(ssim_map, axis=0, keepdims=True)


def _pick_packing(nc, h, w):
    """Choose (BH, BW): planes packed along sublanes / lanes per grid block.

    Targets ~256 packed lanes and ~256 packed rows (fills the v6e/v7x MXU
    contraction and keeps vregs lane-dense for thumbnail-sized inputs), while
    guaranteeing >= 2 grid blocks whenever nc >= 2 (v7x megacore) and exact
    divisibility of nc (no padded planes).
    """
    max_bp = nc if nc == 1 else max(1, nc // 2)   # leave >= 2 grid blocks

    # 1) Lane packing first (biggest win when w < 128): aim for ~256 lanes.
    bw = 1
    for c in range(min(max_bp, max(1, 256 // w)), 0, -1):
        if nc % c == 0:
            bw = c
            break

    # 2) Sublane packing with the remaining budget: aim for ~256 rows, and
    #    prefer choices keeping BH*h a multiple of 8 (tile-aligned slices).
    bh = 1
    bh_cap = min(max_bp // bw, max(1, 256 // h))
    for require_aligned in (True, False):
        found = False
        for c in range(bh_cap, 0, -1):
            if nc % (bw * c) != 0:
                continue
            if require_aligned and (c * h) % 8 != 0:
                continue
            bh = c
            found = True
            break
        if found:
            break
    return bh, bw


@jax.jit
def ssim_loss(img1, img2):
    """1 - SSIM(img1, img2), window_size=11, size_average=True (NCHW inputs)."""
    n, c, h, w = img1.shape
    nc = n * c

    BH, BW = _pick_packing(nc, h, w)
    bsz = BH * BW
    nb = nc // bsz
    R, L = BH * h, BW * w
    rows_out = 8 if R % 8 == 0 else 1

    def pack(img):
        # (N, C, H, W) -> (nb, BH*h, BW*w): BH planes stacked along rows,
        # BW planes side-by-side along lanes.
        x = img.astype(jnp.float32).reshape(nb, BH, BW, h, w)
        x = x.transpose(0, 1, 3, 2, 4)            # (nb, BH, h, BW, w)
        return x.reshape(nb, R, L)

    x1 = pack(img1)
    x2 = pack(img2)

    # Constant blur matrices: built with numpy at trace time, constant-folded
    # into the executable by jit (no per-call host->HBM upload).
    gw = jnp.asarray(_block_diag_toeplitz(w, BW))     # (L, L)
    ghb = jnp.asarray(_block_diag_toeplitz(h, BH))    # (R, R)

    # Rough f32 working-set estimate (double-buffered inputs/outputs/constants
    # plus in-kernel temporaries) -> size the scoped VMEM limit accordingly.
    est_bytes = 4 * (4 * R * L            # x1/x2 (double-buffered)
                     + 2 * L * L + 2 * R * R   # gw/ghb (double-buffered)
                     + 10 * R * L         # stacked s and t
                     + 5 * R * L          # five blurred maps
                     + 8 * R * L          # elementwise tail temporaries
                     + 2 * rows_out * L)  # output tiles
    vmem_limit = int(min(64 * 1024 * 1024, max(32 * 1024 * 1024, 2 * est_bytes)))

    partials = pl.pallas_call(
        _ssim_block_kernel,
        out_shape=jax.ShapeDtypeStruct((nb, rows_out, L), jnp.float32),
        grid_spec=pltpu.PrefetchScalarGridSpec(
            num_scalar_prefetch=0,
            grid=(nb,),
            in_specs=[
                pl.BlockSpec((L, L), lambda i: (0, 0)),
                pl.BlockSpec((R, R), lambda i: (0, 0)),
                pl.BlockSpec((None, R, L), lambda i: (i, 0, 0)),
                pl.BlockSpec((None, R, L), lambda i: (i, 0, 0)),
            ],
            out_specs=pl.BlockSpec((None, rows_out, L), lambda i: (i, 0, 0)),
        ),
        compiler_params=pltpu.CompilerParams(
            dimension_semantics=("parallel",),
            vmem_limit_bytes=vmem_limit),
    )(gw, ghb, x1, x2)

    ssim_sum = jnp.sum(partials)
    return 1.0 - ssim_sum / jnp.float32(nc * h * w)


def _ref_loss(img1, img2):
    # Pure-JAX reference (depthwise conv via lax.conv_general_dilated).
    g = jnp.asarray(_G1D, jnp.float32)
    w2d = jnp.outer(g, g)
    n, c, h, w = img1.shape
    kern = jnp.broadcast_to(w2d, (c, 1, WINDOW_SIZE, WINDOW_SIZE))

    def conv(x):
        return jax.lax.conv_general_dilated(
            x, kern, (1, 1), [(PAD, PAD), (PAD, PAD)],
            dimension_numbers=("NCHW", "OIHW", "NCHW"),
            feature_group_count=c)

    mu1, mu2 = conv(img1), conv(img2)
    s1 = conv(img1 * img1) - mu1 * mu1
    s2 = conv(img2 * img2) - mu2 * mu2
    s12 = conv(img1 * img2) - mu1 * mu2
    m = ((2 * mu1 * mu2 + C1) * (2 * s12 + C2)) / (
        (mu1 * mu1 + mu2 * mu2 + C1) * (s1 + s2 + C2))
    return 1.0 - m.mean()


if __name__ == "__main__":
    key = jax.random.PRNGKey(0)
    k1, k2 = jax.random.split(key)
    img1 = jax.random.uniform(k1, (2, 4, 16, 16), dtype=jnp.float32)
    img2 = jax.random.uniform(k2, (2, 4, 16, 16), dtype=jnp.float32)

    loss = jax.block_until_ready(ssim_loss(img1, img2))
    ref = jax.block_until_ready(_ref_loss(img1, img2))
    assert jnp.allclose(loss, ref, atol=1e-5, rtol=1e-5), (loss, ref)

    print("KERNEL_OK")
</pallas_src>

<mosaic_0001>
module attributes {stable_mosaic.version = 11 : i64} {
  func.func @_ssim_block_kernel(%arg0: i32, %arg1: memref<64x64xf32, #tpu.memory_space<vmem>>, %arg2: memref<16x16xf32, #tpu.memory_space<vmem>>, %arg3: memref<1x16x64xf32, #tpu.memory_space<vmem>>, %arg4: memref<1x16x64xf32, #tpu.memory_space<vmem>>, %arg5: memref<1x8x64xf32, #tpu.memory_space<vmem>>) attributes {dimension_semantics = [#tpu.dimension_semantics<parallel>], iteration_bounds = array<i64: 2>, scalar_prefetch = 0 : i64, scratch_operands = 0 : i64, tpu.core_type = #tpu.core_type<tc>, window_params = [{pipeline_mode = #tpu.pipeline_mode<synchronous>, transform_indices = @transform_0, window_bounds = array<i64: 64, 64>}, {pipeline_mode = #tpu.pipeline_mode<synchronous>, transform_indices = @transform_1, window_bounds = array<i64: 16, 16>}, {transform_indices = @transform_2, window_bounds = array<i64: 1, 16, 64>}, {transform_indices = @transform_3, window_bounds = array<i64: 1, 16, 64>}, {transform_indices = @transform_4, window_bounds = array<i64: 1, 8, 64>}]} {
    %c0 = arith.constant 0 : index
    %c0_0 = arith.constant 0 : index
    %c0_1 = arith.constant 0 : index
    %0 = vector.load %arg3[%c0, %c0_0, %c0_1] : memref<1x16x64xf32, #tpu.memory_space<vmem>>, vector<1x16x64xf32>
    %1 = vector.shape_cast %0 : vector<1x16x64xf32> to vector<16x64xf32>
    %c0_2 = arith.constant 0 : index
    %c0_3 = arith.constant 0 : index
    %c0_4 = arith.constant 0 : index
    %2 = vector.load %arg4[%c0_2, %c0_3, %c0_4] : memref<1x16x64xf32, #tpu.memory_space<vmem>>, vector<1x16x64xf32>
    %3 = vector.shape_cast %2 : vector<1x16x64xf32> to vector<16x64xf32>
    %c0_5 = arith.constant 0 : index
    %c0_6 = arith.constant 0 : index
    %4 = vector.load %arg1[%c0_5, %c0_6] : memref<64x64xf32, #tpu.memory_space<vmem>>, vector<64x64xf32>
    %c0_7 = arith.constant 0 : index
    %c0_8 = arith.constant 0 : index
    %5 = vector.load %arg2[%c0_7, %c0_8] : memref<16x16xf32, #tpu.memory_space<vmem>>, vector<16x16xf32>
    %6 = arith.mulf %1, %1 : vector<16x64xf32>
    %7 = arith.mulf %3, %3 : vector<16x64xf32>
    %8 = arith.mulf %1, %3 : vector<16x64xf32>
    %9 = tpu.concatenate %1, %3, %6, %7, %8 in 0 : vector<16x64xf32>, vector<16x64xf32>, vector<16x64xf32>, vector<16x64xf32>, vector<16x64xf32> -> vector<80x64xf32>
    %cst = arith.constant dense<0.000000e+00> : vector<80x64xf32>
    %10 = tpu.matmul %9, %4, %cst {dimension_numbers = #tpu.dot_dimension_numbers<[1], [0], [0], [1], [0, 0, 1, 1], [], []>} : vector<80x64xf32>, vector<64x64xf32>, vector<80x64xf32> -> vector<80x64xf32>
    %11 = vector.extract_strided_slice %10 {offsets = [0, 0], sizes = [16, 64], strides = [1, 1]} : vector<80x64xf32> to vector<16x64xf32>
    %cst_9 = arith.constant dense<0.000000e+00> : vector<16x64xf32>
    %12 = tpu.matmul %5, %11, %cst_9 {dimension_numbers = #tpu.dot_dimension_numbers<[1], [0], [0], [1], [0, 0, 1, 1], [], []>} : vector<16x16xf32>, vector<16x64xf32>, vector<16x64xf32> -> vector<16x64xf32>
    %13 = vector.extract_strided_slice %10 {offsets = [16, 0], sizes = [16, 64], strides = [1, 1]} : vector<80x64xf32> to vector<16x64xf32>
    %cst_10 = arith.constant dense<0.000000e+00> : vector<16x64xf32>
    %14 = tpu.matmul %5, %13, %cst_10 {dimension_numbers = #tpu.dot_dimension_numbers<[1], [0], [0], [1], [0, 0, 1, 1], [], []>} : vector<16x16xf32>, vector<16x64xf32>, vector<16x64xf32> -> vector<16x64xf32>
    %15 = vector.extract_strided_slice %10 {offsets = [32, 0], sizes = [16, 64], strides = [1, 1]} : vector<80x64xf32> to vector<16x64xf32>
    %cst_11 = arith.constant dense<0.000000e+00> : vector<16x64xf32>
    %16 = tpu.matmul %5, %15, %cst_11 {dimension_numbers = #tpu.dot_dimension_numbers<[1], [0], [0], [1], [0, 0, 1, 1], [], []>} : vector<16x16xf32>, vector<16x64xf32>, vector<16x64xf32> -> vector<16x64xf32>
    %17 = vector.extract_strided_slice %10 {offsets = [48, 0], sizes = [16, 64], strides = [1, 1]} : vector<80x64xf32> to vector<16x64xf32>
    %cst_12 = arith.constant dense<0.000000e+00> : vector<16x64xf32>
    %18 = tpu.matmul %5, %17, %cst_12 {dimension_numbers = #tpu.dot_dimension_numbers<[1], [0], [0], [1], [0, 0, 1, 1], [], []>} : vector<16x16xf32>, vector<16x64xf32>, vector<16x64xf32> -> vector<16x64xf32>
    %19 = vector.extract_strided_slice %10 {offsets = [64, 0], sizes = [16, 64], strides = [1, 1]} : vector<80x64xf32> to vector<16x64xf32>
    %cst_13 = arith.constant dense<0.000000e+00> : vector<16x64xf32>
    %20 = tpu.matmul %5, %19, %cst_13 {dimension_numbers = #tpu.dot_dimension_numbers<[1], [0], [0], [1], [0, 0, 1, 1], [], []>} : vector<16x16xf32>, vector<16x64xf32>, vector<16x64xf32> -> vector<16x64xf32>
    %21 = arith.mulf %12, %12 : vector<16x64xf32>
    %22 = arith.mulf %14, %14 : vector<16x64xf32>
    %23 = arith.mulf %12, %14 : vector<16x64xf32>
    %24 = arith.subf %16, %21 : vector<16x64xf32>
    %25 = arith.subf %18, %22 : vector<16x64xf32>
    %26 = arith.subf %20, %23 : vector<16x64xf32>
    %cst_14 = arith.constant 2.000000e+00 : f32
    %27 = vector.broadcast %cst_14 : f32 to vector<16x64xf32>
    %28 = arith.mulf %27, %23 : vector<16x64xf32>
    %cst_15 = arith.constant 9.99999974E-5 : f32
    %29 = vector.broadcast %cst_15 : f32 to vector<16x64xf32>
    %30 = arith.addf %28, %29 : vector<16x64xf32>
    %cst_16 = arith.constant 2.000000e+00 : f32
    %31 = vector.broadcast %cst_16 : f32 to vector<16x64xf32>
    %32 = arith.mulf %31, %26 : vector<16x64xf32>
    %cst_17 = arith.constant 8.99999984E-4 : f32
    %33 = vector.broadcast %cst_17 : f32 to vector<16x64xf32>
    %34 = arith.addf %32, %33 : vector<16x64xf32>
    %35 = arith.mulf %30, %34 : vector<16x64xf32>
    %36 = arith.addf %21, %22 : vector<16x64xf32>
    %cst_18 = arith.constant 9.99999974E-5 : f32
    %37 = vector.broadcast %cst_18 : f32 to vector<16x64xf32>
    %38 = arith.addf %36, %37 : vector<16x64xf32>
    %39 = arith.addf %24, %25 : vector<16x64xf32>
    %cst_19 = arith.constant 8.99999984E-4 : f32
    %40 = vector.broadcast %cst_19 : f32 to vector<16x64xf32>
    %41 = arith.addf %39, %40 : vector<16x64xf32>
    %42 = arith.mulf %38, %41 : vector<16x64xf32>
    %43 = tpu.reciprocal %42 : vector<16x64xf32> -> vector<16x64xf32>
    %44 = arith.mulf %35, %43 : vector<16x64xf32>
    %45 = vector.extract_strided_slice %44 {offsets = [0, 0], sizes = [8, 64], strides = [1, 1]} : vector<16x64xf32> to vector<8x64xf32>
    %46 = vector.extract_strided_slice %44 {offsets = [8, 0], sizes = [8, 64], strides = [1, 1]} : vector<16x64xf32> to vector<8x64xf32>
    %47 = arith.addf %45, %46 : vector<8x64xf32>
    %c0_20 = arith.constant 0 : index
    %c0_21 = arith.constant 0 : index
    %c0_22 = arith.constant 0 : index
    %48 = vector.load %arg5[%c0_20, %c0_21, %c0_22] : memref<1x8x64xf32, #tpu.memory_space<vmem>>, vector<1x8x64xf32>
    %49 = vector.shape_cast %48 : vector<1x8x64xf32> to vector<8x64xf32>
    %50 = vector.shape_cast %47 : vector<8x64xf32> to vector<1x8x64xf32>
    tpu.vector_store %arg5[%c0_20, %c0_21, %c0_22], %50 {strides = array<i32>} : memref<1x8x64xf32, #tpu.memory_space<vmem>>, vector<1x8x64xf32>,
    return
  }
  func.func @transform_0(%arg0: i32) -> (i32, i32) {
    %c0_i32 = arith.constant 0 : i32
    %c0_i32_0 = arith.constant 0 : i32
    %c0_i32_1 = arith.constant 0 : i32
    return %c0_i32, %c0_i32_0 : i32, i32
  }
  func.func @transform_1(%arg0: i32) -> (i32, i32) {
    %c0_i32 = arith.constant 0 : i32
    %c0_i32_0 = arith.constant 0 : i32
    %c0_i32_1 = arith.constant 0 : i32
    return %c0_i32, %c0_i32_0 : i32, i32
  }
  func.func @transform_2(%arg0: i32) -> (i32, i32, i32) {
    %c0_i32 = arith.constant 0 : i32
    %c0_i32_0 = arith.constant 0 : i32
    %c0_i32_1 = arith.constant 0 : i32
    return %arg0, %c0_i32, %c0_i32_0 : i32, i32, i32
  }
  func.func @transform_3(%arg0: i32) -> (i32, i32, i32) {
    %c0_i32 = arith.constant 0 : i32
    %c0_i32_0 = arith.constant 0 : i32
    %c0_i32_1 = arith.constant 0 : i32
    return %arg0, %c0_i32, %c0_i32_0 : i32, i32, i32
  }
  func.func @transform_4(%arg0: i32) -> (i32, i32, i32) {
    %c0_i32 = arith.constant 0 : i32
    %c0_i32_0 = arith.constant 0 : i32
    %c0_i32_1 = arith.constant 0 : i32
    return %arg0, %c0_i32, %c0_i32_0 : i32, i32, i32
  }
}

</mosaic_0001>

<bundles_post_ra>
// kernel: ssim_loss.1
= control target key start
LH: loop header
LB: loop body
LE: loop exit
PB: predicated region body
PF: predicated region fallthrough
CT: control target
= control target key end

     0   :  { %s1050_s15 = smov 0   ;;  %s1125_s0 = inlined_call_operand.vmem [shape: f32[64,64], index: 0, kind: input, shape index: {}]   ;;  %s1126_s1 = inlined_call_operand.vmem [shape: f32[16,16], index: 1, kind: input, shape index: {}]   ;;  %s1127_s2 = inlined_call_operand.vmem [shape: f32[2,16,64], index: 2, kind: input, shape index: {}]   ;;  %s1128_s3 = inlined_call_operand.vmem [shape: f32[2,16,64], index: 3, kind: input, shape index: {}]   ;;  %s1129_s4 = inlined_call_operand.vmem [shape: f32[2,8,64], index: 4, kind: output, shape index: {}]  }
   0x1 LB: > { %s867_s16 = sadd.s32 4294967295, %s1023_s15   ;;  %p871_p0 = scmp.ge.s32.totalorder %s1023_s15, 1  ;;  %s1023_s15 = sphi %s1050_s15, %s14_s15  }
   0x2   : > { %p172_p1 = scmp.lt.s32.totalorder %s1023_s15, 3 }
   0x4   : > { %p173_p2 = pnand %p871_p0, %p172_p1 }
   0x5   : > { %p202_p3 = scmp.lt.s32.totalorder (!%p173_p2), %s867_s16, 1 }
   0x6   : > { %176 = sbr.rel (%p173_p2) target bundleno = 459 (0x1cb), region = 36 }
   0xb   : > { %v227_v0 = vld [vmem:[%s1125_s0 + $0x38] sm:$0xff]  ;;  %v226_v1 = vld [vmem:[%s1125_s0 + $0x30] sm:$0xff]  ;;  %v225_v2 = vld [vmem:[%s1125_s0 + $0x28] sm:$0xff]  ;;  %s1131_s16 = smov (!%p202_p3, %s867_s16), 1  ;;  %vm236_vm0 = vcmask 523264   ;;  %vm382_vm1 = vcmask 130048  }
   0xc   : > { %939 = vmatprep.subr.mxu0 %v227_v0  ;;  %v224_v3 = vld [vmem:[%s1125_s0 + $0x20] sm:$0xff]  ;;  %s899_s25 = sshll.u32 %s1131_s16, 4  ;;  %v223_v4 = vld [vmem:[%s1125_s0 + $0x18] sm:$0xff]  ;;  %v222_v6 = vld [vmem:[%s1125_s0 + $0x10] sm:$0xff]  ;;  %s876_s20 = sshll.u32 %s1131_s16, 3 }
   0xd   : > { %940 = vmatpush3.msra.mxu0 %v227_v0  ;;  %s206_s28 = scalar_lea.vmem %s1127_s2, %s899_s25  ;;  %v221_v7 = vld [vmem:[%s1125_s0 + $0x8] sm:$0xff]  ;;  %v220_v8 = vld [vmem:[%s1125_s0] sm:$0xff]  ;;  %s211_s13 = scalar_lea.vmem %s1128_s3, %s899_s25 }
   0xe   : > { %941 = vmatprep.subr.mxu0 %v226_v1  ;;  %v216_v5 = vld [vmem:[%s206_s28] sm:$0xff]  ;;  %v217_v9 = vld [vmem:[%s206_s28 + $0x8] sm:$0xff]  ;;  %s215_s23 = scalar_lea.vmem %s1129_s4, %s876_s20 }
   0xf   : > { %942 = vmatpush3.msra.mxu0 %v226_v1  ;;  %955 = vmatprep.mubr.msk.f32.mxu0 %vm236_vm0, %v216_v5  ;;  %v218_v10 = vld [vmem:[%s211_s13] sm:$0xff]  ;;  %v230_v11 = vmul.f32 %v216_v5, %v216_v5  ;;  %v219_v12 = vld [vmem:[%s211_s13 + $0x8] sm:$0xff]  ;;  %v231_v13 = vmul.f32 %v217_v9, %v217_v9 }
  0x10   : > { %943 = vmatprep.subr.mxu0 %v225_v2  ;;  %v232_v14 = vmul.f32 %v218_v10, %v218_v10  ;;  %v233_v15 = vmul.f32 %v219_v12, %v219_v12  ;;  %v234_v16 = vmul.f32 %v218_v10, %v216_v5  ;;  %v235_v17 = vmul.f32 %v219_v12, %v217_v9  ;;  %v228_v18 = vld [vmem:[%s1126_s1] sm:$0xff]  ;;  %v229_v21 = vld [vmem:[%s1126_s1 + $0x8] sm:$0xff] }
  0x11   : > { %944 = vmatpush3.msra.mxu0 %v225_v2  ;;  %974 = vmatprep.mubr.msk.f32.mxu1 %vm382_vm1, %v228_v18 }
  0x12   : > { %945 = vmatprep.subr.mxu0 %v224_v3 }
  0x13   : > { %946 = vmatpush3.msra.mxu0 %v224_v3 }
  0x14   : > { %947 = vmatprep.subr.mxu0 %v223_v4 }
  0x15   : > { %948 = vmatpush3.msra.mxu0 %v223_v4 }
  0x16   : > { %949 = vmatprep.subr.mxu0 %v222_v6 }
  0x17   : > { %950 = vmatpush3.msra.mxu0 %v222_v6 }
  0x18   : > { %951 = vmatprep.subr.mxu0 %v221_v7 }
  0x19   : > { %952 = vmatpush3.msra.mxu0 %v221_v7 }
  0x1a   : > { %953 = vmatprep.subr.mxu0 %v220_v8 }
  0x1b   : > { %954 = vmatpush3.msra.mxu0 %v220_v8 }
  0x1c   : > { %956 = vmatmul.mubr.msk.f32.vlgmr.msra.gmra.mxu0 %vm236_vm0, %v217_v9 }
  0x1d   : > { %958 = vmatprep.mubr.msk.f32.mxu0 %vm236_vm0, %v218_v10 }
  0x20   : > { %959 = vmatmul.mubr.msk.f32.gmra.mxu0 %vm236_vm0, %v219_v12 }
  0x21   : > { %961 = vmatprep.mubr.msk.f32.mxu0 %vm236_vm0, %v230_v11 }
  0x24   : > { %962 = vmatmul.mubr.msk.f32.gmra.mxu0 %vm236_vm0, %v231_v13 }
  0x25   : > { %964 = vmatprep.mubr.msk.f32.mxu0 %vm236_vm0, %v232_v14 }
  0x28   : > { %965 = vmatmul.mubr.msk.f32.gmra.mxu0 %vm236_vm0, %v233_v15 }
  0x29   : > { %967 = vmatprep.mubr.msk.f32.mxu0 %vm236_vm0, %v234_v16 }
  0x2c   : > { %968 = vmatmul.mubr.msk.f32.gmra.mxu0 %vm236_vm0, %v235_v17 }
  0xdc   : > { %v957_v19 = vpop.f32.mrf.mxu0 }
  0xdd   : > { %970 = vmatprep.subr.mxu1 %v957_v19 }
  0xde   : > { %v333_v20 = vpop.f32.mrf.mxu0  ;;  %971 = vmatpush3.msra.mxu1 %v957_v19 }
  0xdf   : > { %972 = vmatprep.subr.mxu1 %v333_v20 }
  0xe0   : > { %v960_v22 = vpop.f32.mrf.mxu0  ;;  %973 = vmatpush3.msra.mxu1 %v333_v20 }
  0xe1   : > { %975 = vmatmul.mubr.msk.f32.vlgmr.msra.gmra.mxu1 %vm382_vm1, %v229_v21  ;;  %977 = vmatprep.subr.mxu1 %v960_v22 }
  0xe2   : > { %v343_v23 = vpop.f32.mrf.mxu0  ;;  %978 = vmatpush3.msra.mxu1 %v960_v22  ;;  %981 = vmatprep.mubr.msk.f32.mxu1 %vm382_vm1, %v228_v18 }
  0xe3   : > { %979 = vmatprep.subr.mxu1 %v343_v23 }
  0xe4   : > { %v963_v24 = vpop.f32.mrf.mxu0  ;;  %980 = vmatpush3.msra.mxu1 %v343_v23 }
  0xe5   : > { %982 = vmatmul.mubr.msk.f32.vlgmr.msra.gmra.mxu1 %vm382_vm1, %v229_v21  ;;  %984 = vmatprep.subr.mxu1 %v963_v24 }
  0xe6   : > { %v353_v25 = vpop.f32.mrf.mxu0  ;;  %985 = vmatpush3.msra.mxu1 %v963_v24  ;;  %988 = vmatprep.mubr.msk.f32.mxu1 %vm382_vm1, %v228_v18 }
  0xe7   : > { %986 = vmatprep.subr.mxu1 %v353_v25 }
  0xe8   : > { %v966_v26 = vpop.f32.mrf.mxu0  ;;  %987 = vmatpush3.msra.mxu1 %v353_v25 }
  0xe9   : > { %989 = vmatmul.mubr.msk.f32.vlgmr.msra.gmra.mxu1 %vm382_vm1, %v229_v21  ;;  %991 = vmatprep.subr.mxu1 %v966_v26 }
  0xea   : > { %v363_v27 = vpop.f32.mrf.mxu0  ;;  %992 = vmatpush3.msra.mxu1 %v966_v26  ;;  %995 = vmatprep.mubr.msk.f32.mxu1 %vm382_vm1, %v228_v18 }
  0xeb   : > { %993 = vmatprep.subr.mxu1 %v363_v27 }
  0xec   : > { %v969_v28 = vpop.f32.mrf.mxu0  ;;  %994 = vmatpush3.msra.mxu1 %v363_v27 }
  0xed   : > { %996 = vmatmul.mubr.msk.f32.vlgmr.msra.gmra.mxu1 %vm382_vm1, %v229_v21  ;;  %998 = vmatprep.subr.mxu1 %v969_v28 }
  0xee   : > { %v373_v29 = vpop.f32.mrf.mxu0  ;;  %999 = vmatpush3.msra.mxu1 %v969_v28  ;;  %1002 = vmatprep.mubr.msk.f32.mxu1 %vm382_vm1, %v228_v18 }
  0xef   : > { %1000 = vmatprep.subr.mxu1 %v373_v29 }
  0xf0   : > { %1001 = vmatpush3.msra.mxu1 %v373_v29 }
  0xf1   : > { %1003 = vmatmul.mubr.msk.f32.vlgmr.msra.gmra.mxu1 %vm382_vm1, %v229_v21 }
 0x1a1   : > { %v976_v30 = vpop.f32.mrf.mxu1 }
 0x1a2   : > { %v765_v37 = vmul.f32 %v976_v30, %v976_v30 }
 0x1a3   : > { %v455_v31 = vpop.f32.mrf.mxu1 }
 0x1a4   : > { %v764_v40 = vmul.f32 %v455_v31, %v455_v31 }
 0x1a5   : > { %v983_v32 = vpop.f32.mrf.mxu1 }
 0x1a6   : > { %v767_v35 = vmul.f32 %v983_v32, %v983_v32  ;;  %v769_v57 = vmul.f32 %v983_v32, %v976_v30 }
 0x1a7   : > { %v530_v33 = vpop.f32.mrf.mxu1 }
 0x1a8   : > { %v766_v38 = vmul.f32 %v530_v33, %v530_v33  ;;  %v787_v41 = vadd.f32 %v767_v35, %v765_v37  ;;  %v768_v58 = vmul.f32 %v530_v33, %v455_v31  ;;  %v777_v0 = vmul.f32 2.0, %v769_v57 }
 0x1a9   : > { %v990_v34 = vpop.f32.mrf.mxu1 }
 0x1aa   : > { %v771_v42 = vsub.f32 %v990_v34, %v765_v37  ;;  %v786_v45 = vadd.f32 %v766_v38, %v764_v40  ;;  %v789_v50 = vadd.f32 0.0001, %v787_v41  ;;  %v776_v1 = vmul.f32 2.0, %v768_v58 }
 0x1ab   : > { %v605_v36 = vpop.f32.mrf.mxu1  ;;  %v779_v4 = vadd.f32 0.0001, %v777_v0 }
 0x1ac   : > { %v770_v46 = vsub.f32 %v605_v36, %v764_v40  ;;  %v788_v53 = vadd.f32 0.0001, %v786_v45  ;;  %v778_v5 = vadd.f32 0.0001, %v776_v1 }
 0x1ad   : > { %v997_v39 = vpop.f32.mrf.mxu1 }
 0x1ae   : > { %v773_v43 = vsub.f32 %v997_v39, %v767_v35 }
 0x1af   : > { %v680_v44 = vpop.f32.mrf.mxu1 }
 0x1b0   : > { %v791_v47 = vadd.f32 %v773_v43, %v771_v42  ;;  %v772_v48 = vsub.f32 %v680_v44, %v766_v38 }
 0x1b1   : > { %v1004_v49 = vpop.f32.mrf.mxu1 }
 0x1b2   : > { %v793_v51 = vadd.f32 0.0009, %v791_v47  ;;  %v790_v52 = vadd.f32 %v772_v48, %v770_v46  ;;  %v775_v60 = vsub.f32 %v1004_v49, %v769_v57 }
 0x1b3   : > { %v755_v56 = vpop.f32.mrf.mxu1 }
 0x1b4   : > { %v795_v54 = vmul.f32 %v793_v51, %v789_v50  ;;  %v792_v55 = vadd.f32 0.0009, %v790_v52  ;;  %v774_v61 = vsub.f32 %v755_v56, %v768_v58  ;;  %v781_v62 = vmul.f32 2.0, %v775_v60 }
 0x1b6   : > { %1013 = vrcp.f32 %v795_v54  ;;  %v794_v59 = vmul.f32 %v792_v55, %v788_v53  ;;  %v780_v63 = vmul.f32 2.0, %v774_v61  ;;  %v783_v2 = vadd.f32 0.0009, %v781_v62 }
 0x1b8   : > { %1015 = vrcp.f32 %v794_v59  ;;  %v782_v3 = vadd.f32 0.0009, %v780_v63  ;;  %v785_v7 = vmul.f32 %v783_v2, %v779_v4 }
 0x1ba   : > { %v784_v8 = vmul.f32 %v782_v3, %v778_v5 }
 0x1c3   : > { %v1014_v6 = vpop.eup %1013 }
 0x1c4   : > { %v799_v10 = vmul.f32 %v1014_v6, %v785_v7 }
 0x1c5   : > { %v1016_v9 = vpop.eup %1015 }
 0x1c6   : > { %v798_v11 = vmul.f32 %v1016_v9, %v784_v8 }
 0x1c8   : > { %v800_v12 = vadd.f32 %v799_v10, %v798_v11 }
 0x1ca   : > { %801 = vst.msk [vmem:[%s215_s23] sm:$0xff] %vm236_vm0, %v800_v12 }
 0x1cb PF: > { %s14_s15 = sadd.s32 1, %s1023_s15  }
 0x1cc   : > { %p11_p4 = scmp.ge.s32.totalorder %s14_s15, 4  }
 0x1ce   :  { %13 = sbr.rel (!%p11_p4) target bundleno = 1 (0x1), region = 69 }

</bundles_post_ra>
